<compile_context>
chip_gen: v5e
topology: v5e:2x2
jax: 0.10.0
libtpu: 0.0.40
codegen_flags: <defaults>
</compile_context>

<pallas_src>
import functools

import jax
import jax.numpy as jnp
from jax import lax
from jax.experimental import pallas as pl
from jax.experimental.pallas import tpu as pltpu


@functools.lru_cache(maxsize=None)
def _pltpu_roll_is_numpy_style() -> bool:
    """One-time probe of pltpu.roll's direction convention (vs. jnp.roll)."""
    def kern(x_ref, o_ref):
        o_ref[...] = pltpu.roll(x_ref[...], 1, 1)

    x = jnp.arange(8 * 128, dtype=jnp.float32).reshape(8, 128)
    y = pl.pallas_call(
        kern, out_shape=jax.ShapeDtypeStruct((8, 128), jnp.float32))(x)
    # np.roll(x, 1) puts the last element first.
    return bool(y[0, 0] == x[0, 127])


def _block_kernel(xph_ref, wg1_ref, w2_ref, b1_ref, b2_ref, out_ref, *,
                  conv1_groups, conv2_taps, planes, ho, wo, block_n,
                  np_style_roll):
    """Fused StochasticBlock forward for `block_n` lane-packed images.

    xph_ref : (G, Cin, L)          stride-phase decomposed input, L = block_n*Ho*Wo
    wg1_ref : (G, 9*P + P, Cin)    per-phase conv1 weights (bn1 scale folded),
                                   rows [9P:10P] = shortcut identity / G
    w2_ref  : (9*P, P)             conv2 weights (bn2 scale folded)
    b1_ref, b2_ref : (P, 1)        folded BatchNorm biases
    out_ref : (block_n, P, S)      S = Ho*Wo
    """
    P = planes
    S = ho * wo
    L = block_n * S
    f32 = jnp.float32

    # Per-lane (row, col) inside each image, built once per grid step from an
    # integer iota (float div/floor only — exact at these magnitudes).
    it = lax.broadcasted_iota(jnp.int32, (1, L), 1).astype(f32)
    img = jnp.floor(it / S)
    j = it - img * S                       # flat spatial index inside the image
    row = jnp.floor(j / wo)
    col = j - row * wo
    mask_y = {0: None, -1: row >= 0.5, 1: row <= ho - 1.5}
    mask_x = {0: None, -1: col >= 0.5, 1: col <= wo - 1.5}
    # Combined boundary mask per (ry, rx) shift, shared by both convs.
    masks = {}
    for ry in (-1, 0, 1):
        for rx in (-1, 0, 1):
            m = None
            for part in (mask_y[ry], mask_x[rx]):
                if part is not None:
                    m = part if m is None else jnp.logical_and(m, part)
            masks[(ry, rx)] = m

    def shift_and_mask(block, ry, rx):
        # block[:, i] holds the tap's contribution at flat position i; the tap's
        # value at output i is block[:, i + ry*wo + rx] when in-bounds, else 0.
        # The roll wraps across image boundaries only at positions the boundary
        # masks zero out (those are exactly the conv's zero-padding positions).
        d = ry * wo + rx
        t = block
        if d != 0:
            amt = (-d) % L if np_style_roll else d % L
            t = pltpu.roll(t, amt, 1)          # lane rotate on the XLU
        m = masks[(ry, rx)]
        if m is not None:
            t = jnp.where(m, t, 0.0)
        return t

    b1 = b1_ref[...]                           # (P, 1)
    b2 = b2_ref[...]
    n_groups = len(conv1_groups)

    # ---- conv1 (bn1 scale folded) + shortcut rows: one matmul per phase ----
    acc1 = jnp.zeros((P, L), f32)
    sc = jnp.zeros((P, L), f32)
    for g in range(n_groups):
        xg = xph_ref[g].astype(f32)                                  # (Cin, L)
        yg = jnp.dot(wg1_ref[g], xg, preferred_element_type=f32)     # (10P, L)
        for (k, ry, rx) in conv1_groups[g]:
            acc1 = acc1 + shift_and_mask(yg[k * P:(k + 1) * P, :], ry, rx)
        sc = sc + yg[9 * P:, :]          # summed over phases == AvgPool shortcut
    h = jnp.maximum(acc1 + b1, 0.0)                                  # bn1 + relu

    # ---- conv2 (bn2 scale folded): a single matmul + 9 rolls/masks ----
    y2 = jnp.dot(w2_ref[...], h, preferred_element_type=f32)         # (9P, L)
    acc2 = jnp.zeros((P, L), f32)
    for (k, ry, rx) in conv2_taps:
        acc2 = acc2 + shift_and_mask(y2[k * P:(k + 1) * P, :], ry, rx)

    # ---- bn2 bias + residual (already zero-extended via the identity rows) ----
    res = jnp.maximum(acc2 + b2 + sc, 0.0).astype(out_ref.dtype)     # (P, L)

    # Per-image stores; slices are vreg-aligned when b*S % 128 == 0, otherwise an
    # XLU roll brings that image's columns to lane offset 0 before the store.
    for b in range(block_n):
        off = b * S
        if off % 128 == 0:
            out_ref[b] = res[:, off:off + S]
        else:
            amt = (-off) % L if np_style_roll else off % L
            out_ref[b] = pltpu.roll(res, amt, 1)[:, :S]


def _pick_block_n(n, S, target_lanes=1024, max_lanes=4096):
    """Images per grid step (lane-packed).

    Constraints: block_n | n, and block_n*S % 128 == 0 (lane tile) unless
    block_n == n (block == full last dim, always legal)."""
    valid = [d for d in range(1, n + 1)
             if n % d == 0 and ((d * S) % 128 == 0 or d == n)]
    capped = [d for d in valid if d * S <= max_lanes] or valid[:1]
    for d in capped:
        if d * S >= target_lanes:
            return d
    return capped[-1]


def stochastic_block_forward(x_nchw, params, *, stride=1, survival_rate=1.0,
                             block_n=None):
    """Eval-mode forward of StochasticBlock. Input/output are NCHW float32."""
    del survival_rate  # eval mode: conv branch always taken, no rescale
    w1, w2 = params["w1"], params["w2"]          # HWIO layout: (3, 3, Cin, P)
    cin, planes = int(w1.shape[2]), int(w1.shape[3])
    increasing = cin != planes
    if increasing:
        assert planes == 2 * cin
    n, c, h, w = x_nchw.shape
    s = int(stride)
    assert c == cin and s >= 1 and h % s == 0 and w % s == 0
    ho, wo = h // s, w // s
    S = ho * wo
    G = s * s
    P = planes

    # ---- stride-phase decomposition + channel-major relayout of the input ----
    # xph[g, ci, b*S + yo*wo + xo] = x[b, ci, yo*s + sy, xo*s + sx], g = sy*s + sx
    xr = x_nchw.reshape(n, c, ho, s, wo, s)
    xph = jnp.transpose(xr, (3, 5, 1, 0, 2, 4)).reshape(G, c, n * S)

    # ---- fold eval-mode BatchNorm into conv weights + a bias vector ----
    eps = 1e-5
    s1 = params["gamma1"] / jnp.sqrt(params["var1"] + eps)
    b1 = params["beta1"] - params["mean1"] * s1
    s2 = params["gamma2"] / jnp.sqrt(params["var2"] + eps)
    b2 = params["beta2"] - params["mean2"] * s2

    w1t = (jnp.transpose(w1, (0, 1, 3, 2)) * s1[None, None, :, None]
           ).reshape(9, P, cin)                                   # (9, P, Cin)
    w2r = (jnp.transpose(w2, (0, 1, 3, 2)) * s2[None, None, :, None]
           ).reshape(9 * P, P)                                    # (9P, P)

    # ---- static tap bookkeeping: tap k=(ky,kx) -> stride phase + residual shift ----
    def _split(o):
        p = o % s
        return p, (o - p) // s

    tap_group, tap_shift = [], []
    for k in range(9):
        ky, kx = divmod(k, 3)
        py, ry = _split(ky - 1)
        px, rx = _split(kx - 1)
        tap_group.append(py * s + px)
        tap_shift.append((ry, rx))
    conv1_groups = tuple(
        tuple((k,) + tap_shift[k] for k in range(9) if tap_group[k] == g)
        for g in range(G))
    conv2_taps = tuple((k, k // 3 - 1, k % 3 - 1) for k in range(9))

    # ---- per-phase conv1 weights augmented with shortcut (identity) rows ----
    # Rows [9P:10P] compute eye(P,Cin)/G @ x_phase; summed over the G phases this
    # is exactly the AvgPool2d(stride) shortcut, zero-extended over channels when
    # `increasing` (eye(P, Cin) has zero rows for the new channels).
    eye_sc = jnp.eye(P, cin, dtype=jnp.float32) / G
    zeros_pc = jnp.zeros((P, cin), jnp.float32)
    wg1 = jnp.stack([
        jnp.concatenate(
            [w1t[k] if tap_group[k] == g else zeros_pc for k in range(9)]
            + [eye_sc], axis=0)
        for g in range(G)], axis=0)                               # (G, 10P, Cin)

    b1v = b1.reshape(P, 1).astype(jnp.float32)
    b2v = b2.reshape(P, 1).astype(jnp.float32)

    if block_n is None:
        block_n = _pick_block_n(n, S)
    assert n % block_n == 0
    assert (block_n * S) % 128 == 0 or block_n == n

    kernel = functools.partial(
        _block_kernel,
        conv1_groups=conv1_groups, conv2_taps=conv2_taps,
        planes=P, ho=ho, wo=wo, block_n=block_n,
        np_style_roll=_pltpu_roll_is_numpy_style())

    out_flat = pl.pallas_call(
        kernel,
        out_shape=jax.ShapeDtypeStruct((n, P, S), jnp.float32),
        grid=(n // block_n,),
        in_specs=[
            pl.BlockSpec((G, cin, block_n * S), lambda i: (0, 0, i)),
            pl.BlockSpec((G, 10 * P, cin), lambda i: (0, 0, 0)),
            pl.BlockSpec((9 * P, P), lambda i: (0, 0)),
            pl.BlockSpec((P, 1), lambda i: (0, 0)),
            pl.BlockSpec((P, 1), lambda i: (0, 0)),
        ],
        out_specs=pl.BlockSpec((block_n, P, S), lambda i: (i, 0, 0)),
        compiler_params=pltpu.CompilerParams(
            dimension_semantics=("parallel",),
            vmem_limit_bytes=32 * 1024 * 1024),
    )(xph, wg1, w2r, b1v, b2v)

    return out_flat.reshape(n, P, ho, wo)       # NCHW, free reshape


def ref_forward(x_nchw, params, *, stride=1):
    """Pure-JAX reference of the eval-mode PyTorch forward (NCHW)."""
    w1, w2 = params["w1"], params["w2"]
    cin, planes = w1.shape[2], w1.shape[3]
    increasing = cin != planes
    eps = 1e-5

    def conv(x, w, s):
        return lax.conv_general_dilated(
            x, w, (s, s), ((1, 1), (1, 1)),
            dimension_numbers=("NCHW", "HWIO", "NCHW"))

    def bn(x, g, b, m, v):
        g, b, m, v = (t[None, :, None, None] for t in (g, b, m, v))
        return (x - m) / jnp.sqrt(v + eps) * g + b

    n, c, h, w = x_nchw.shape
    if stride == 1:
        sc = x_nchw
    else:
        sc = x_nchw.reshape(n, c, h // stride, stride,
                            w // stride, stride).mean(axis=(3, 5))
    if increasing:
        sc = jnp.concatenate([sc, jnp.zeros_like(sc)], axis=1)

    hid = jax.nn.relu(bn(conv(x_nchw, w1, stride),
                         params["gamma1"], params["beta1"],
                         params["mean1"], params["var1"]))
    hid = bn(conv(hid, w2, 1),
             params["gamma2"], params["beta2"],
             params["mean2"], params["var2"])
    return jax.nn.relu(hid + sc)


def init_params(key, inplanes, planes):
    ks = jax.random.split(key, 10)
    return {
        "w1": 0.1 * jax.random.normal(ks[0], (3, 3, inplanes, planes), jnp.float32),
        "w2": 0.1 * jax.random.normal(ks[1], (3, 3, planes, planes), jnp.float32),
        "gamma1": 1.0 + 0.1 * jax.random.normal(ks[2], (planes,), jnp.float32),
        "beta1": 0.1 * jax.random.normal(ks[3], (planes,), jnp.float32),
        "mean1": 0.1 * jax.random.normal(ks[4], (planes,), jnp.float32),
        "var1": jax.random.uniform(ks[5], (planes,), jnp.float32, 0.5, 1.5),
        "gamma2": 1.0 + 0.1 * jax.random.normal(ks[6], (planes,), jnp.float32),
        "beta2": 0.1 * jax.random.normal(ks[7], (planes,), jnp.float32),
        "mean2": 0.1 * jax.random.normal(ks[8], (planes,), jnp.float32),
        "var2": jax.random.uniform(ks[9], (planes,), jnp.float32, 0.5, 1.5),
    }


if __name__ == "__main__":
    key = jax.random.PRNGKey(0)
    cases = [
        # (batch, inplanes, planes, spatial, stride)
        (2, 4, 8, 16, 1),      # increasing channels, stride 1 (spec demo config)
        (4, 8, 8, 16, 1),      # identity shortcut, several images per grid step
        (2, 8, 16, 16, 2),     # downsampling block: AvgPool shortcut + expansion
    ]
    for idx, (batch, inplanes, planes, spatial, stride) in enumerate(cases):
        k_x, k_p, key = jax.random.split(key, 3)
        x = jax.random.normal(k_x, (batch, inplanes, spatial, spatial), jnp.float32)
        params = init_params(k_p, inplanes, planes)

        out = stochastic_block_forward(x, params, stride=stride, survival_rate=1.0)
        out = jax.block_until_ready(out)
        ref = ref_forward(x, params, stride=stride)

        assert out.shape == (batch, planes, spatial // stride, spatial // stride), (
            idx, out.shape)
        max_err = float(jnp.max(jnp.abs(out - ref)))
        assert max_err < 2e-3, f"case {idx}: max abs error vs reference: {max_err}"
    print("KERNEL_OK")
</pallas_src>

<mosaic_0001>
module attributes {stable_mosaic.version = 11 : i64} {
  func.func @kern(%arg0: memref<8x128xf32, #tpu.memory_space<vmem>>, %arg1: memref<8x128xf32, #tpu.memory_space<vmem>>) attributes {dimension_semantics = [], scalar_prefetch = 0 : i64, scratch_operands = 0 : i64, tpu.core_type = #tpu.core_type<tc>} {
    %c0 = arith.constant 0 : index
    %c0_0 = arith.constant 0 : index
    %0 = vector.load %arg0[%c0, %c0_0] : memref<8x128xf32, #tpu.memory_space<vmem>>, vector<8x128xf32>
    %c1_i32 = arith.constant 1 : i32
    %1 = tpu.dynamic_rotate %0 by %c1_i32 dim 1 : vector<8x128xf32>, i32 -> vector<8x128xf32>
    %c0_1 = arith.constant 0 : index
    %c0_2 = arith.constant 0 : index
    %2 = vector.load %arg1[%c0_1, %c0_2] : memref<8x128xf32, #tpu.memory_space<vmem>>, vector<8x128xf32>
    tpu.vector_store %arg1[%c0_1, %c0_2], %1 {strides = array<i32>} : memref<8x128xf32, #tpu.memory_space<vmem>>, vector<8x128xf32>,
    return
  }
}

</mosaic_0001>

<bundles_post_ra>
// kernel: tpu_custom_call.1
= control target key start
LH: loop header
LB: loop body
LE: loop exit
PB: predicated region body
PF: predicated region fallthrough
CT: control target
= control target key end

     0   :  { %6 = vsyncpa [#allocation3], 0  ;;  %s118_s0 = inlined_call_operand.hbm [shape: f32[8,128], index: 0, kind: input, shape index: {}]   ;;  %s119_s1 = inlined_call_operand.hbm [shape: f32[8,128], index: 1, kind: output, shape index: {}]  }
   0x1   :  { %7 = vsyncpa [#allocation4], 0  ;;  %s13_s8 = sshll.u32 %s118_s0, 4  ;;  %s99_s9 = smov [#allocation2]   ;;  %s14_s8 = int_to_ptr.hbm [resolvable:$true] %s13_s8 }
   0x2   :  { %s15_s10 = sshll.u32 %s99_s9, 4  ;;  %s16_s10 = int_to_ptr.vmem [resolvable:$true] %s15_s10 }
   0x3   :  { %18 = dma.hbm_to_vmem [thread:$0]  %s14_s8, 128, %s16_s10, [#allocation3]  }
   0x4   :  { %95 = dma.done.wait [#allocation3], 128  }
   0x5   :  { %96 = vsyncadd [#allocation3], 4294967168  ;;  %v23_v0 = vld [vmem:[#allocation2] sm:$0xff]  ;;  %s100_s11 = smov 1   ;;  %s101_s12 = smov [#allocation5]  }
   0x6   :  { %24 = vrot.lane.b32.xlu0 %v23_v0, %s100_s11  ;;  %s32_s13 = sshll.u32 %s101_s12, 4  ;;  %s34_s16 = sshll.u32 %s119_s1, 4  ;;  %s33_s13 = int_to_ptr.vmem [resolvable:$true] %s32_s13  ;;  %s35_s16 = int_to_ptr.hbm [resolvable:$true] %s34_s16 }
  0x78   :  { %v25_v1 = vpop.permute.xlu0 %24 }
  0x79   :  { %26 = vst [vmem:[#allocation5] sm:$0xff] %v25_v1 }
  0x7a   :  { %37 = dma.vmem_to_hbm [thread:$0]  %s33_s13, 128, %s35_s16, [#allocation4]  }
  0x7b   :  { %97 = dma.done.wait [#allocation4], 128  }
  0x7c   :  { %98 = vsyncadd [#allocation4], 4294967168 }
  0x7d   :  { %42 = vsyncpa [#allocation3], 1 }
  0x7e   :  { %43 = vsyncpa [#allocation4], 1 }

</bundles_post_ra>
